<compile_context>
chip_gen: v7x
topology: tpu7x:2x2x1
jax: 0.10.0
libtpu: 0.0.40
codegen_flags: <defaults>
</compile_context>

<pallas_src>
import jax
import jax.numpy as jnp
from jax.experimental import pallas as pl
from jax.experimental.pallas import tpu as pltpu


def _identity_kernel(x_ref, o_ref):
    # Straight copy of the current (B, block_s) tile.
    o_ref[...] = x_ref[...]


def other_identity(rec_audio: jax.Array, *, tile_s: int = 2048) -> jax.Array:
    """Identity noise layer. rec_audio: (B, S), any dtype."""
    B, S = rec_audio.shape

    if S <= tile_s:
        # Single full-extent block: last dim == array dim, so it is exempt
        # from the 128-lane divisibility rule. No grid loop, no padding.
        block_s = S
        grid = (1,)
    else:
        # Lane-dense tile (multiple of 128). The final partial block (if any)
        # is masked by Pallas, so S need not be a multiple of tile_s.
        block_s = tile_s
        grid = (pl.cdiv(S, tile_s),)

    return pl.pallas_call(
        _identity_kernel,
        out_shape=jax.ShapeDtypeStruct((B, S), rec_audio.dtype),
        grid_spec=pltpu.PrefetchScalarGridSpec(
            num_scalar_prefetch=0,
            grid=grid,
            # Full batch dim per block (never tiled); 1-D grid over samples.
            in_specs=[pl.BlockSpec((B, block_s), lambda j: (0, j))],
            out_specs=pl.BlockSpec((B, block_s), lambda j: (0, j)),
        ),
        compiler_params=pltpu.CompilerParams(
            dimension_semantics=("parallel",),
        ),
    )(rec_audio)


if __name__ == "__main__":
    key = jax.random.PRNGKey(0)
    k0, k1 = jax.random.split(key)

    # Small audio-like input: batch=2, samples=1000 (not a multiple of 128;
    # exercises the single full-extent-block path — no pad, no slice).
    rec_audio = jax.random.normal(k0, (2, 1000), dtype=jnp.float32)
    noised_audio = jax.block_until_ready(other_identity(rec_audio))
    assert noised_audio.shape == rec_audio.shape
    assert noised_audio.dtype == rec_audio.dtype
    assert bool(jnp.all(noised_audio == rec_audio))

    # Also exercise the tiled path with S > tile_s and S % tile_s != 0
    # (masked edge block, still no pad/slice glue).
    rec_long = jax.random.normal(k1, (2, 5000), dtype=jnp.float32)
    noised_long = jax.block_until_ready(other_identity(rec_long, tile_s=2048))
    assert noised_long.shape == rec_long.shape
    assert bool(jnp.all(noised_long == rec_long))

    print("KERNEL_OK")
</pallas_src>

<mosaic_0001>
module attributes {stable_mosaic.version = 11 : i64} {
  func.func @_identity_kernel(%arg0: i32, %arg1: memref<2x1000xf32, #tpu.memory_space<vmem>>, %arg2: memref<2x1000xf32, #tpu.memory_space<vmem>>) attributes {dimension_semantics = [#tpu.dimension_semantics<parallel>], iteration_bounds = array<i64: 1>, scalar_prefetch = 0 : i64, scratch_operands = 0 : i64, tpu.core_type = #tpu.core_type<tc>, window_params = [{transform_indices = @transform_0, window_bounds = array<i64: 2, 1000>}, {transform_indices = @transform_1, window_bounds = array<i64: 2, 1000>}]} {
    %c0 = arith.constant 0 : index
    %c0_0 = arith.constant 0 : index
    %0 = vector.load %arg1[%c0, %c0_0] : memref<2x1000xf32, #tpu.memory_space<vmem>>, vector<2x1000xf32>
    %c0_1 = arith.constant 0 : index
    %c0_2 = arith.constant 0 : index
    %1 = vector.load %arg2[%c0_1, %c0_2] : memref<2x1000xf32, #tpu.memory_space<vmem>>, vector<2x1000xf32>
    tpu.vector_store %arg2[%c0_1, %c0_2], %0 {strides = array<i32>} : memref<2x1000xf32, #tpu.memory_space<vmem>>, vector<2x1000xf32>,
    return
  }
  func.func @transform_0(%arg0: i32) -> (i32, i32) {
    %c0_i32 = arith.constant 0 : i32
    %c0_i32_0 = arith.constant 0 : i32
    return %c0_i32, %arg0 : i32, i32
  }
  func.func @transform_1(%arg0: i32) -> (i32, i32) {
    %c0_i32 = arith.constant 0 : i32
    %c0_i32_0 = arith.constant 0 : i32
    return %c0_i32, %arg0 : i32, i32
  }
}

</mosaic_0001>

<bundles_post_ra>
// kernel: tpu_custom_call.1
= control target key start
LH: loop header
LB: loop body
LE: loop exit
PB: predicated region body
PF: predicated region fallthrough
CT: control target
= control target key end

     0   :  { %6 = vsyncpa [#allocation3], 0  ;;  %s133_s0 = inlined_call_operand.hbm [shape: f32[2,1000], index: 0, kind: input, shape index: {}]   ;;  %s134_s1 = inlined_call_operand.hbm [shape: f32[2,1000], index: 1, kind: output, shape index: {}]  }
   0x1   :  { %7 = vsyncpa [#allocation4], 0  ;;  %s97_s6 = smov [#allocation2]   ;;  %s49_s10 = scalar_lea.hbm %s133_s0, 256 }
   0x2   :  { %s14_s7 = sshll.u32 %s97_s6, 4  ;;  %p50_p0 = scmp.ne.s32.totalorder %s133_s0, %s49_s10  ;;  %s15_s7 = int_to_ptr.vmem [resolvable:$true] %s14_s7 }
   0x3   :  { %p53_p1 = scmp.lt.u32.totalorder %s49_s10, %s133_s0 }
   0x5   :  { %p55_p2 = pnand %p53_p1, %p50_p0 }
   0x7   :  { %58 = shalt.err (!%p55_p2)
}
   0x8   :  { %s59_s15 = scalar_lea.vmem %s15_s7, 256  ;;  %p64_p4 = scmp.lt.s32.totalorder %s15_s7, %s15_s7 }
   0x9   :  { %p60_p3 = scmp.ne.s32.totalorder %s15_s7, %s59_s15  ;;  %p65_p5 = scmp.lt.s32.totalorder %s59_s15, %s59_s15 }
   0xb   :  { %p66_p6 = por %p65_p5, %p64_p4 }
   0xd   :  { %p67_p7 = pnand %p66_p6, %p60_p3 }
   0xf   :  { %70 = shalt.err (!%p67_p7)
}
  0x10   :  { %17 = dma.hbm_to_vmem [thread:$0]  %s133_s0, 256, %s15_s7, [#allocation3]  }
  0x11   :  { %93 = dma.done.wait [#allocation3], 256  }
  0x12   :  { %94 = vsyncadd [#allocation3], 4294967040  ;;  %vm24_vm0 = vcmask 1041408   ;;  %vm25_vm1 = vcmask 1043458   ;;  %vm27_vm2 = vcmask 1045508   ;;  %vm29_vm5 = vcmask 850950  }
  0x13   :  { %vm26_vm3 = vmor %vm25_vm1, %vm24_vm0  ;;  %s98_s18 = smov [#allocation5]   ;;  %v21_v0 = vld [vmem:[#allocation2] sm:$0xff]  ;;  %v22_v1 = vld [vmem:[#allocation2 + $0x8] sm:$0xff] }
  0x14   :  { %vm28_vm4 = vmor %vm27_vm2, %vm26_vm3  ;;  %s38_s19 = sshll.u32 %s98_s18, 4  ;;  %23 = vst [vmem:[#allocation5] sm:$0xff] %v21_v0  ;;  %s39_s19 = int_to_ptr.vmem [resolvable:$true] %s38_s19 }
  0x15   :  { %vm30_vm6 = vmor %vm29_vm5, %vm28_vm4  ;;  %s71_s20 = scalar_lea.vmem %s39_s19, 256  ;;  %p76_p9 = scmp.lt.s32.totalorder %s39_s19, %s39_s19 }
  0x16   :  { %31 = vst.msk [vmem:[#allocation5 + $0x8] sm:$0xff] %vm30_vm6, %v22_v1  ;;  %p72_p8 = scmp.ne.s32.totalorder %s39_s19, %s71_s20  ;;  %p77_p10 = scmp.lt.s32.totalorder %s71_s20, %s71_s20 }
  0x18   :  { %p78_p11 = por %p77_p10, %p76_p9 }
  0x1a   :  { %p79_p12 = pnand %p78_p11, %p72_p8 }
  0x1c   :  { %82 = shalt.err (!%p79_p12)
}
  0x1d   :  { %s83_s22 = scalar_lea.hbm %s134_s1, 256 }
  0x1e   :  { %p84_p13 = scmp.ne.s32.totalorder %s134_s1, %s83_s22  ;;  %p87_p0 = scmp.lt.u32.totalorder %s83_s22, %s134_s1 }
  0x20   :  { %p89_p1 = pnand %p87_p0, %p84_p13 }
  0x22   :  { %92 = shalt.err (!%p89_p1)
}
  0x23   :  { %41 = dma.vmem_to_hbm [thread:$0]  %s39_s19, 256, %s134_s1, [#allocation4]  }
  0x24   :  { %95 = dma.done.wait [#allocation4], 256  }
  0x25   :  { %96 = vsyncadd [#allocation4], 4294967040 }
  0x26   :  { %45 = vsyncpa [#allocation3], 1 }
  0x27   :  { %46 = vsyncpa [#allocation4], 1 }

</bundles_post_ra>
